<compile_context>
chip_gen: v7x
topology: tpu7x:2x2x1
jax: 0.10.0
libtpu: 0.0.40
codegen_flags: <defaults>
</compile_context>

<pallas_src>
import functools

import jax
import jax.numpy as jnp
import numpy as np
from jax.experimental import pallas as pl
from jax.experimental.pallas import tpu as pltpu


def _round_up(x, q):
    return ((x + q - 1) // q) * q


def _pick_tile(dim, cap, quantum):
    """Largest tile <= cap that divides `dim` and is a multiple of `quantum`;
    falls back to the full dim (always a legal block) when none exists."""
    if dim <= cap:
        return dim
    t = (cap // quantum) * quantum
    while t >= quantum:
        if dim % t == 0:
            return t
        t -= quantum
    return dim


# ---------------------------------------------------------------------------
# l2_norm helper (module dependency) — lane-dense 2-D Pallas kernel.
# ---------------------------------------------------------------------------
def _l2norm_kernel(x_ref, o_ref, *, eps, axis):
    x = x_ref[...].astype(jnp.float32)
    norm = jnp.sqrt(jnp.sum(x * x, axis=axis, keepdims=True)) + eps
    o_ref[...] = (x * pl.reciprocal(norm, approx=False)).astype(o_ref.dtype)


def l2_norm(x, axis=1, eps=1e-6):
    """Pallas equivalent of the module's l2_norm for 2-D inputs, axis in {0, 1}."""
    assert x.ndim == 2 and axis in (0, 1)
    R, C = x.shape
    if axis == 1:                               # normalize rows; batch rows per block
        tb = _pick_tile(R, 256, 8)
        grid = (R // tb,)
        spec = pl.BlockSpec((tb, C), lambda i: (i, 0))
    else:                                       # normalize columns; tile class axis
        tc = _pick_tile(C, 512, 128)
        grid = (C // tc,)
        spec = pl.BlockSpec((R, tc), lambda j: (0, j))

    return pl.pallas_call(
        functools.partial(_l2norm_kernel, eps=eps, axis=axis),
        out_shape=jax.ShapeDtypeStruct((R, C), x.dtype),
        grid=grid,
        in_specs=[spec],
        out_specs=spec,
        compiler_params=pltpu.CompilerParams(dimension_semantics=("parallel",)),
    )(x)


# ---------------------------------------------------------------------------
# Fused ArcFace kernel: col-L2-norm + cos matmul + margin scatter + cross-entropy.
# ---------------------------------------------------------------------------
def _arcface_kernel(lab_ref, e_ref, w_ref, out_ref, cos_ref, nll_ref,
                    acc_ref, wsq_ref, m_ref, l_ref, t_ref,
                    *, eps, cos_m, sin_m, mm, threshold, s, tc, num_classes):
    # Hoist ALL grid queries out of the pl.when closures (required for the
    # interpret fallback; free on TPU).
    j = pl.program_id(1)
    k = pl.program_id(2)
    nj = pl.num_programs(1)
    nk = pl.num_programs(2)

    @pl.when(k == 0)
    def _():
        acc_ref[...] = jnp.zeros_like(acc_ref)
        wsq_ref[...] = jnp.zeros_like(wsq_ref)

    @pl.when(jnp.logical_and(k == 0, j == 0))
    def _():
        m_ref[...] = jnp.full_like(m_ref, -jnp.inf)   # CE running max
        l_ref[...] = jnp.zeros_like(l_ref)            # CE running sum(exp)
        t_ref[...] = jnp.zeros_like(t_ref)            # label-column logit

    # MXU matmul in the operands' native dtype, f32 accumulation.
    acc_ref[...] += jnp.dot(e_ref[...], w_ref[...],
                            preferred_element_type=jnp.float32)
    wf = w_ref[...].astype(jnp.float32)               # f32 only for the norm accum
    wsq_ref[...] += jnp.sum(wf * wf, axis=0, keepdims=True)

    @pl.when(k == nk - 1)
    def _():
        # cos_theta = (E @ W) / (||w_col|| + eps) == E @ (W / (||w_col|| + eps))
        inv_norm = pl.reciprocal(jnp.sqrt(wsq_ref[...]) + eps, approx=False)
        cos = jnp.clip(acc_ref[...] * inv_norm, -1.0, 1.0)          # (tb, tc) f32

        col = tc * j + jax.lax.broadcasted_iota(jnp.int32, cos.shape, 1)
        onehot = col == lab_ref[...]                                  # (tb, tc)

        # Margin math restricted to the label column (one masked lane reduce);
        # rows whose label is outside this class tile fall through to `cos`.
        cos_l = jnp.sum(jnp.where(onehot, cos, 0.0), axis=1, keepdims=True)
        sin_l = jnp.sqrt(jnp.maximum(1.0 - cos_l * cos_l, 0.0))
        ctm = cos_l * cos_m - sin_l * sin_m
        ctm = jnp.where(cos_l - threshold <= 0.0, cos_l - mm, ctm)    # (tb, 1)

        out = jnp.where(onehot, ctm, cos) * s                         # (tb, tc) f32
        out_ref[...] = out.astype(out_ref.dtype)
        cos_ref[...] = cos.astype(cos_ref.dtype)

        # Fused cross-entropy (flash-style logsumexp across the class tiles),
        # done on the f32 tile; padded class columns are masked out.
        logit = jnp.where(col < num_classes, out, -jnp.inf)
        m_new = jnp.maximum(m_ref[...], jnp.max(logit, axis=1, keepdims=True))
        l_ref[...] = (l_ref[...] * jnp.exp(m_ref[...] - m_new)
                      + jnp.sum(jnp.exp(logit - m_new), axis=1, keepdims=True))
        m_ref[...] = m_new
        t_ref[...] += jnp.sum(jnp.where(onehot, out, 0.0), axis=1, keepdims=True)

    @pl.when(jnp.logical_and(k == nk - 1, j == nj - 1))
    def _():
        nll_ref[...] = (m_ref[...] + jnp.log(l_ref[...])) - t_ref[...]


def arcface_logits(embeddings, weight, label, *, s, m, eps=1e-6,
                   tb_cap=512, tc_cap=1024, tk_cap=512):
    """Returns (output, cos_theta, per_row_nll).  output/cos_theta: (B, C) in
    embeddings.dtype; per_row_nll: (B,) f32 cross-entropy computed in-kernel."""
    B, D = embeddings.shape
    D2, C = weight.shape
    assert D == D2 and label.shape == (B,)
    assert tb_cap % 8 == 0 and tc_cap % 128 == 0 and tk_cap % 128 == 0

    # Tile sizes (sublane/lane quanta) and zero-padded problem sizes.
    tb = min(tb_cap, _round_up(B, 8))
    tc = min(tc_cap, _round_up(C, 128))
    tk = min(tk_cap, _round_up(D, 128))
    Bp, Cp, Dp = _round_up(B, tb), _round_up(C, tc), _round_up(D, tk)

    emb_p = embeddings if (Bp, Dp) == (B, D) else jnp.pad(
        embeddings, ((0, Bp - B), (0, Dp - D)))
    w_p = weight if (Dp, Cp) == (D, C) else jnp.pad(
        weight, ((0, Dp - D), (0, Cp - C)))
    lab_p = label if Bp == B else jnp.pad(label, (0, Bp - B))
    lab2d = lab_p.astype(jnp.int32).reshape(Bp, 1)

    grid = (Bp // tb, Cp // tc, Dp // tk)
    out_dtype = embeddings.dtype

    cos_m = float(np.cos(m))
    sin_m = float(np.sin(m))
    mm = float(np.sin(m) * m)
    threshold = float(np.cos(np.pi - m))

    kernel = functools.partial(
        _arcface_kernel, eps=float(eps), cos_m=cos_m, sin_m=sin_m, mm=mm,
        threshold=threshold, s=float(s), tc=tc, num_classes=C)

    output, cos_theta, nll = pl.pallas_call(
        kernel,
        out_shape=(jax.ShapeDtypeStruct((Bp, Cp), out_dtype),
                   jax.ShapeDtypeStruct((Bp, Cp), out_dtype),
                   jax.ShapeDtypeStruct((Bp, 1), jnp.float32)),
        grid_spec=pltpu.PrefetchScalarGridSpec(
            num_scalar_prefetch=0,
            grid=grid,
            in_specs=[
                pl.BlockSpec((tb, 1), lambda i, j, k: (i, 0)),    # labels
                pl.BlockSpec((tb, tk), lambda i, j, k: (i, k)),   # embeddings
                # v5e note: pipeline_mode=pl.Buffered(3) on this spec deepens
                # buffering of the dominant W stream if DMA is exposed.
                pl.BlockSpec((tk, tc), lambda i, j, k: (k, j)),   # weight (D, C)
            ],
            out_specs=[
                pl.BlockSpec((tb, tc), lambda i, j, k: (i, j)),   # s * margin logits
                pl.BlockSpec((tb, tc), lambda i, j, k: (i, j)),   # cos_theta
                pl.BlockSpec((tb, 1), lambda i, j, k: (i, 0)),    # per-row NLL
            ],
            scratch_shapes=[
                pltpu.VMEM((tb, tc), jnp.float32),   # matmul accumulator
                pltpu.VMEM((1, tc), jnp.float32),    # per-column sum(W^2)
                pltpu.VMEM((tb, 1), jnp.float32),    # CE running max
                pltpu.VMEM((tb, 1), jnp.float32),    # CE running sum(exp)
                pltpu.VMEM((tb, 1), jnp.float32),    # label-column logit
            ],
        ),
        compiler_params=pltpu.CompilerParams(
            # Class axis carries the fused-CE state -> "arbitrary"; batch axis
            # stays "parallel" (on v7x pick tb_cap <= B//2 for >= 2 i-blocks).
            dimension_semantics=("parallel", "arbitrary", "arbitrary"),
            vmem_limit_bytes=64 * 1024 * 1024,
        ),
    )(lab2d, emb_p, w_p)

    if (Bp, Cp) != (B, C):
        output = output[:B, :C]
        cos_theta = cos_theta[:B, :C]
        nll = nll[:B]
    return output, cos_theta, nll[:, 0]


def arcface_forward(embeddings, weight, label, *, s, m, eps=1e-6, **tile_kwargs):
    """Mirrors ArcfaceMultiGPU.forward (single shard): (loss, output, cos_theta)."""
    output, cos_theta, nll = arcface_logits(
        embeddings, weight, label, s=s, m=m, eps=eps, **tile_kwargs)
    loss = jnp.mean(nll)
    return loss, output, cos_theta


if __name__ == "__main__":
    key = jax.random.PRNGKey(0)
    k1, k2, k3 = jax.random.split(key, 3)

    # Small ArcFace-shaped problem: batch=16, embedding_size=160, classnum=200.
    # Non-multiples of the tile quanta + tiny tile caps deliberately exercise
    # the padded multi-tile (i, j, k) grid, the CE class-mask and the scatter.
    B, D, C = 16, 160, 200
    s_scale, margin = 32.0, 0.5

    emb_raw = jax.random.normal(k1, (B, D), dtype=jnp.float32)
    weight = jax.random.uniform(k2, (D, C), minval=-1.0, maxval=1.0, dtype=jnp.float32)
    label = jax.random.randint(k3, (B,), 0, C, dtype=jnp.int32)

    # Backbone embeddings are L2-normalized (typical ArcFace usage) — also
    # exercises the standalone l2_norm kernel on both reduction axes.
    emb = l2_norm(emb_raw, axis=1)
    wn_check = l2_norm(weight, axis=0)

    loss, output, cos_theta = arcface_forward(
        emb, weight, label, s=s_scale, m=margin,
        tb_cap=8, tc_cap=128, tk_cap=128)
    loss = jax.block_until_ready(loss)
    output = jax.block_until_ready(output)
    cos_theta = jax.block_until_ready(cos_theta)

    # ---------------- pure-JAX reference (mirrors the PyTorch forward) ----------------
    eps = 1e-6
    ref_emb = emb_raw / (jnp.sqrt(jnp.sum(emb_raw**2, axis=1, keepdims=True)) + eps)
    ref_wn = weight / (jnp.sqrt(jnp.sum(weight**2, axis=0, keepdims=True)) + eps)
    cos_m, sin_m = np.cos(margin), np.sin(margin)
    mm, threshold = np.sin(margin) * margin, np.cos(np.pi - margin)
    ref_cos = jnp.clip(ref_emb @ ref_wn, -1.0, 1.0)
    ref_sin = jnp.sqrt(jnp.maximum(1.0 - ref_cos**2, 0.0))
    ref_ctm = ref_cos * cos_m - ref_sin * sin_m
    ref_ctm = jnp.where(ref_cos - threshold <= 0.0, ref_cos - mm, ref_ctm)
    idx = jnp.arange(B)
    ref_out = ref_cos.at[idx, label].set(ref_ctm[idx, label]) * s_scale
    ref_lse = jax.nn.logsumexp(ref_out, axis=-1)
    ref_loss = jnp.mean(ref_lse - ref_out[idx, label])

    np.testing.assert_allclose(np.asarray(emb), np.asarray(ref_emb), rtol=1e-5, atol=1e-6)
    np.testing.assert_allclose(np.asarray(wn_check), np.asarray(ref_wn), rtol=1e-5, atol=1e-6)
    np.testing.assert_allclose(np.asarray(cos_theta), np.asarray(ref_cos), rtol=1e-5, atol=1e-5)
    np.testing.assert_allclose(np.asarray(output), np.asarray(ref_out), rtol=1e-5, atol=1e-4)
    np.testing.assert_allclose(np.asarray(loss), np.asarray(ref_loss), rtol=1e-5, atol=1e-4)

    print("KERNEL_OK")
</pallas_src>

<mosaic_0001>
module attributes {stable_mosaic.version = 11 : i64} {
  func.func @_l2norm_kernel(%arg0: i32, %arg1: memref<16x160xf32, #tpu.memory_space<vmem>>, %arg2: memref<16x160xf32, #tpu.memory_space<vmem>>) attributes {dimension_semantics = [#tpu.dimension_semantics<parallel>], iteration_bounds = array<i64: 1>, scalar_prefetch = 0 : i64, scratch_operands = 0 : i64, tpu.core_type = #tpu.core_type<tc>, window_params = [{transform_indices = @transform_0, window_bounds = array<i64: 16, 160>}, {transform_indices = @transform_1, window_bounds = array<i64: 16, 160>}]} {
    %c0 = arith.constant 0 : index
    %c0_0 = arith.constant 0 : index
    %0 = vector.load %arg1[%c0, %c0_0] : memref<16x160xf32, #tpu.memory_space<vmem>>, vector<16x160xf32>
    %1 = arith.mulf %0, %0 : vector<16x160xf32>
    %cst = arith.constant dense<0.000000e+00> : vector<16xf32>
    %2 = vector.multi_reduction <add>, %1, %cst [1] : vector<16x160xf32> to vector<16xf32>
    %3 = vector.shape_cast %2 : vector<16xf32> to vector<16x1xf32>
    %4 = math.sqrt %3 : vector<16x1xf32>
    %cst_1 = arith.constant 9.99999997E-7 : f32
    %5 = vector.broadcast %cst_1 : f32 to vector<16x1xf32>
    %6 = arith.addf %4, %5 : vector<16x1xf32>
    %7 = tpu.reciprocal %6 : vector<16x1xf32> -> vector<16x1xf32>
    %8 = vector.broadcast %7 : vector<16x1xf32> to vector<16x160xf32>
    %9 = arith.mulf %0, %8 : vector<16x160xf32>
    %c0_2 = arith.constant 0 : index
    %c0_3 = arith.constant 0 : index
    %10 = vector.load %arg2[%c0_2, %c0_3] : memref<16x160xf32, #tpu.memory_space<vmem>>, vector<16x160xf32>
    tpu.vector_store %arg2[%c0_2, %c0_3], %9 {strides = array<i32>} : memref<16x160xf32, #tpu.memory_space<vmem>>, vector<16x160xf32>,
    return
  }
  func.func @transform_0(%arg0: i32) -> (i32, i32) {
    %c0_i32 = arith.constant 0 : i32
    %c0_i32_0 = arith.constant 0 : i32
    return %arg0, %c0_i32 : i32, i32
  }
  func.func @transform_1(%arg0: i32) -> (i32, i32) {
    %c0_i32 = arith.constant 0 : i32
    %c0_i32_0 = arith.constant 0 : i32
    return %arg0, %c0_i32 : i32, i32
  }
}

</mosaic_0001>

<bundles_post_ra>
// kernel: tpu_custom_call.1
= control target key start
LH: loop header
LB: loop body
LE: loop exit
PB: predicated region body
PF: predicated region fallthrough
CT: control target
= control target key end

     0   :  { %6 = vsyncpa [#allocation3], 0  ;;  %s191_s0 = inlined_call_operand.hbm [shape: f32[16,160], index: 0, kind: input, shape index: {}]   ;;  %s192_s1 = inlined_call_operand.hbm [shape: f32[16,160], index: 1, kind: output, shape index: {}]  }
   0x1   :  { %7 = vsyncpa [#allocation4], 0  ;;  %s143_s6 = smov [#allocation2]   ;;  %s95_s10 = scalar_lea.hbm %s191_s0, 512 }
   0x2   :  { %s13_s7 = sshll.u32 %s143_s6, 4  ;;  %p96_p0 = scmp.ne.s32.totalorder %s191_s0, %s95_s10  ;;  %s14_s7 = int_to_ptr.vmem [resolvable:$true] %s13_s7 }
   0x3   :  { %p99_p1 = scmp.lt.u32.totalorder %s95_s10, %s191_s0 }
   0x5   :  { %p101_p2 = pnand %p99_p1, %p96_p0 }
   0x7   :  { %104 = shalt.err (!%p101_p2)
}
   0x8   :  { %s105_s15 = scalar_lea.vmem %s14_s7, 512  ;;  %p110_p4 = scmp.lt.s32.totalorder %s14_s7, %s14_s7 }
   0x9   :  { %p106_p3 = scmp.ne.s32.totalorder %s14_s7, %s105_s15  ;;  %p111_p5 = scmp.lt.s32.totalorder %s105_s15, %s105_s15 }
   0xb   :  { %p112_p6 = por %p111_p5, %p110_p4 }
   0xd   :  { %p113_p7 = pnand %p112_p6, %p106_p3 }
   0xf   :  { %116 = shalt.err (!%p113_p7)
}
  0x10   :  { %s144_s16 = smov 256   ;;  %s145_s17 = smov 16  }
  0x11   :  { %19 = dma.hbm_to_vmem [thread:$0]  %s191_s0, 512, %s14_s7, [#allocation3], %s144_s16, %s144_s16, %s145_s17  }
  0x12   :  { %139 = dma.done.wait [#allocation3], 512  }
  0x13   :  { %140 = vsyncadd [#allocation3], 4294966784  ;;  %v23_v0 = vld [vmem:[#allocation2] sm:$0xff]  ;;  %v24_v1 = vld [vmem:[#allocation2 + $0x8] sm:$0xff]  ;;  %vm31_vm0 = vcmask 261120   ;;  %s146_s0 = smov [#allocation5]  }
  0x14   :  { %v25_v2 = vld [vmem:[#allocation2 + $0x10] sm:$0xff]  ;;  %v27_v3 = vmul.f32 %v23_v0, %v23_v0  ;;  %v28_v4 = vmul.f32 %v24_v1, %v24_v1  ;;  %v26_v5 = vld [vmem:[#allocation2 + $0x18] sm:$0xff]  ;;  %s71_s20 = sshll.u32 %s146_s0, 4  ;;  %s72_s20 = int_to_ptr.vmem [resolvable:$true] %s71_s20 }
  0x15   :  { %v29_v6 = vmul.f32 %v25_v2, %v25_v2  ;;  %v30_v7 = vmul.f32 %v26_v5, %v26_v5  ;;  %s117_s21 = scalar_lea.vmem %s72_s20, 512  ;;  %p122_p9 = scmp.lt.s32.totalorder %s72_s20, %s72_s20 }
  0x16   :  { %v32_v8 = vsel %vm31_vm0, %v28_v4, 0.0  ;;  %p118_p8 = scmp.ne.s32.totalorder %s72_s20, %s117_s21  ;;  %p123_p10 = scmp.lt.s32.totalorder %s117_s21, %s117_s21 }
  0x17   :  { %v33_v9 = vadd.f32 %v32_v8, %v27_v3  ;;  %v36_v10 = vsel %vm31_vm0, %v30_v7, 0.0 }
  0x18   :  { %v37_v11 = vadd.f32 %v36_v10, %v29_v6  ;;  %p124_p11 = por %p123_p10, %p122_p9 }
  0x19   :  { %34 = vadd.xlane.f32.xlu0 %v33_v9 }
  0x1a   :  { %p125_p12 = pnand %p124_p11, %p118_p8 }
  0x1d   :  { %38 = vadd.xlane.f32.xlu0 %v37_v11 }
  0xa6   :  { %v35_v12 = vpop.xlane.xlu0 %34 }
  0xa7   :  { %87 = vrsqrt.f32 %v35_v12  ;;  %vm42_vm1 = vcmp.eq.f32.partialorder %v35_v12, inf  ;;  %v45_v16 = vand.u32 2147483648, %v35_v12  ;;  %vm44_vm2 = vcmp.eq.f32.partialorder %v35_v12, 0.0 }
  0xaa   :  { %v39_v13 = vpop.xlane.xlu0 %38 }
  0xab   :  { %89 = vrsqrt.f32 %v39_v13  ;;  %vm49_vm3 = vcmp.eq.f32.partialorder %v39_v13, inf  ;;  %v52_v22 = vand.u32 2147483648, %v39_v13  ;;  %vm51_vm4 = vcmp.eq.f32.partialorder %v39_v13, 0.0 }
  0xb1   :  { %v88_v14 = vpop.eup %87 }
  0xb2   :  { %v41_v15 = vmul.f32 %v88_v14, %v35_v12 }
  0xb4   :  { %v43_v17 = vsel %vm42_vm1, %v35_v12, %v41_v15 }
  0xb5   :  { %v90_v18 = vpop.eup %89  ;;  %v46_v19 = vsel %vm44_vm2, %v45_v16, %v43_v17 }
  0xb6   :  { %v54_v20 = vadd.f32 1e-06, %v46_v19  ;;  %v48_v21 = vmul.f32 %v90_v18, %v39_v13 }
  0xb8   :  { %91 = vrcp.f32 %v54_v20  ;;  %v50_v23 = vsel %vm49_vm3, %v39_v13, %v48_v21 }
  0xb9   :  { %v53_v24 = vsel %vm51_vm4, %v52_v22, %v50_v23 }
  0xba   :  { %v55_v25 = vadd.f32 1e-06, %v53_v24 }
  0xbc   :  { %93 = vrcp.f32 %v55_v25 }
  0xc2   :  { %v92_v26 = vpop.eup %91 }
  0xc3   :  { %v58_v27 = vmul.f32 %v92_v26, %v23_v0  ;;  %v59_v28 = vmul.f32 %v92_v26, %v24_v1 }
  0xc5   :  { %62 = vst [vmem:[#allocation5] sm:$0xff] %v58_v27  ;;  %63 = vst.msk [vmem:[#allocation5 + $0x8] sm:$0xff] %vm31_vm0, %v59_v28 }
  0xc6   :  { %v94_v29 = vpop.eup %93 }
  0xc7   :  { %v60_v30 = vmul.f32 %v94_v29, %v25_v2  ;;  %v61_v31 = vmul.f32 %v94_v29, %v26_v5 }
  0xc9   :  { %64 = vst [vmem:[#allocation5 + $0x10] sm:$0xff] %v60_v30  ;;  %65 = vst.msk [vmem:[#allocation5 + $0x18] sm:$0xff] %vm31_vm0, %v61_v31 }
  0xca   :  { %128 = shalt.err (!%p125_p12)
}
  0xcb   :  { %s129_s24 = scalar_lea.hbm %s192_s1, 512 }
  0xcc   :  { %p130_p13 = scmp.ne.s32.totalorder %s192_s1, %s129_s24  ;;  %p133_p0 = scmp.lt.u32.totalorder %s129_s24, %s192_s1 }
  0xce   :  { %p135_p1 = pnand %p133_p0, %p130_p13 }
  0xd0   :  { %138 = shalt.err (!%p135_p1)
}
  0xd1   :  { %77 = dma.vmem_to_hbm [thread:$0]  %s72_s20, 512, %s192_s1, [#allocation4], %s144_s16, %s144_s16, %s145_s17  }
  0xd2   :  { %141 = dma.done.wait [#allocation4], 512  }
  0xd3   :  { %142 = vsyncadd [#allocation4], 4294966784 }
  0xd4   :  { %81 = vsyncpa [#allocation3], 1 }
  0xd5   :  { %82 = vsyncpa [#allocation4], 1 }

</bundles_post_ra>
